<compile_context>
chip_gen: v7x
topology: tpu7x:2x2x1
jax: 0.10.0
libtpu: 0.0.40
codegen_flags: <defaults>
</compile_context>

<pallas_src>
import math
import functools

import jax
import jax.numpy as jnp
from jax import lax
from jax.experimental import pallas as pl
from jax.experimental.pallas import tpu as pltpu


def _vmem_limit(est_bytes):
    # Never below the v6e/v7x 32 MiB default (so it only raises v5e's 16 MiB),
    # 2x headroom over the estimate, capped under v7x's 64 MiB physical VMEM.
    return int(min(max(2 * est_bytes + (8 << 20), 32 << 20), 56 << 20))


# ----------------------------- linear kernels ------------------------------ #
def _linear_bias_kernel(x_ref, w_ref, b_ref, o_ref):
    # x: (TM, din) bf16, w: (din, dout) bf16 [pre-transposed], b: (1, dout) f32
    y = jnp.dot(x_ref[...], w_ref[...], preferred_element_type=jnp.float32)
    o_ref[...] = (y + b_ref[...]).astype(o_ref.dtype)


def _linear_nobias_kernel(x_ref, w_ref, o_ref):
    o_ref[...] = jnp.dot(x_ref[...], w_ref[...],
                         preferred_element_type=jnp.float32).astype(o_ref.dtype)


def pallas_linear(x2d, w, b=None, *, tm_max=512):
    """Row-tiled y = x @ w (+ b). Weight block is constant-index and
    single-buffered (VMEM resident)."""
    n, din = x2d.shape
    dout = w.shape[1]
    tm = n if n <= tm_max else tm_max
    grid = (pl.cdiv(n, tm),)
    xb = x2d.dtype.itemsize
    est = (2 * tm * din * xb + din * dout * w.dtype.itemsize + dout * 4
           + 2 * tm * dout * xb + tm * dout * 4)
    common = dict(
        out_shape=jax.ShapeDtypeStruct((n, dout), x2d.dtype),
        grid=grid,
        out_specs=pl.BlockSpec((tm, dout), lambda i: (i, 0)),
        compiler_params=pltpu.CompilerParams(
            dimension_semantics=("parallel",),
            vmem_limit_bytes=_vmem_limit(est)),
    )
    w_spec = pl.BlockSpec((din, dout), lambda i: (0, 0),
                          pipeline_mode=pl.Buffered(1))
    if b is not None:
        b_spec = pl.BlockSpec((1, dout), lambda i: (0, 0),
                              pipeline_mode=pl.Buffered(1))
        return pl.pallas_call(
            _linear_bias_kernel,
            in_specs=[pl.BlockSpec((tm, din), lambda i: (i, 0)), w_spec, b_spec],
            **common,
        )(x2d, w, b.reshape(1, dout))
    return pl.pallas_call(
        _linear_nobias_kernel,
        in_specs=[pl.BlockSpec((tm, din), lambda i: (i, 0)), w_spec],
        **common,
    )(x2d, w)


# ------------------------- fused QKV projection ----------------------------- #
def _qkv_kernel(x_ref, w_ref, b_ref, oq_ref, ok_ref, ov_ref):
    # x: (TM, din) bf16, w: (din, 3*HD) bf16, b: (1, 3*HD) f32; three lane-dense outs.
    y = jnp.dot(x_ref[...], w_ref[...], preferred_element_type=jnp.float32)
    y = y + b_ref[...]
    d = oq_ref.shape[-1]
    oq_ref[...] = y[:, :d].astype(oq_ref.dtype)
    ok_ref[...] = y[:, d:2 * d].astype(ok_ref.dtype)
    ov_ref[...] = y[:, 2 * d:].astype(ov_ref.dtype)


def pallas_qkv_fused(x2d, w_qkv, b_qkv, dout, *, tm_max=512):
    """Single pass over the activation for all three projections (self-attn)."""
    n, din = x2d.shape
    tm = n if n <= tm_max else tm_max
    grid = (pl.cdiv(n, tm),)
    xb = x2d.dtype.itemsize
    est = (2 * tm * din * xb + din * 3 * dout * w_qkv.dtype.itemsize
           + 3 * dout * 4 + 3 * 2 * tm * dout * xb + tm * 3 * dout * 4)
    out_sd = jax.ShapeDtypeStruct((n, dout), x2d.dtype)
    return pl.pallas_call(
        _qkv_kernel,
        out_shape=(out_sd, out_sd, out_sd),
        grid=grid,
        in_specs=[
            pl.BlockSpec((tm, din), lambda i: (i, 0)),
            pl.BlockSpec((din, 3 * dout), lambda i: (0, 0),
                         pipeline_mode=pl.Buffered(1)),
            pl.BlockSpec((1, 3 * dout), lambda i: (0, 0),
                         pipeline_mode=pl.Buffered(1)),
        ],
        out_specs=(
            pl.BlockSpec((tm, dout), lambda i: (i, 0)),
            pl.BlockSpec((tm, dout), lambda i: (i, 0)),
            pl.BlockSpec((tm, dout), lambda i: (i, 0)),
        ),
        compiler_params=pltpu.CompilerParams(
            dimension_semantics=("parallel",),
            vmem_limit_bytes=_vmem_limit(est)),
    )(x2d, w_qkv, b_qkv.reshape(1, 3 * dout))


# ------------- relative-position attention + fused out-projection ----------- #
def _rel_attn_kernel(q_ref, k_ref, v_ref, p_ref, bu_ref, bv_ref, m_ref,
                     wout_ref, bout_ref, o_ref, acc_ref, xo_ref,
                     *, scale, hb, dk, approx_recip):
    f32 = jnp.float32
    g = pl.program_id(2)

    @pl.when(g == 0)
    def _init():
        acc_ref[...] = jnp.zeros_like(acc_ref)

    cdt = q_ref.dtype                           # compute dtype (bf16 typically)
    q = q_ref[0].astype(f32)                    # (TQ, hbd)
    bu = bu_ref[...]                            # (1, hbd) f32
    bv = bv_ref[...]
    # Fold the 1/sqrt(dk) softmax scale into q, once per block (not per head,
    # not on the (TQ,T2) scores).
    qu = ((q + bu) * scale).astype(cdt)
    qv = ((q + bv) * scale).astype(cdt)
    k = k_ref[0]                                # (T2, hbd) cdt
    p = p_ref[0]
    v = v_ref[0]
    bad = m_ref[0] == 0                         # (Tm_blk, T2), Tm_blk in {1, TQ}

    tq = qu.shape[0]
    t2 = k.shape[0]
    # Build the per-head [qu|qv] / [k|p] interleaves ONCE per block; each head's
    # slice is then a contiguous 2*dk window (lane-aligned when dk % 64 == 0).
    q_cat = jnp.concatenate(
        [qu.reshape(tq, hb, dk), qv.reshape(tq, hb, dk)], axis=-1
    ).reshape(tq, hb * 2 * dk)
    kp_cat = jnp.concatenate(
        [k.reshape(t2, hb, dk), p.reshape(t2, hb, dk)], axis=-1
    ).reshape(t2, hb * 2 * dk)

    for h in range(hb):                         # hb is small & static
        c0, c1 = h * 2 * dk, (h + 1) * 2 * dk
        # Fused (ac + bd): one (TQ, 2dk) x (2dk, T2) MXU contraction, bf16 in,
        # f32 accumulate.  Scale is already folded into q.
        scores = lax.dot_general(
            q_cat[:, c0:c1], kp_cat[:, c0:c1],
            dimension_numbers=(((1,), (1,)), ((), ())),
            preferred_element_type=f32)                      # (TQ, T2) f32
        # Finite fill in f32 (not -inf): fully-masked rows stay NaN-free.
        scores = jnp.where(bad, -1e30, scores)
        smax = jnp.max(scores, axis=-1, keepdims=True)
        # bf16 exponentials (EUP bf16 path on v6e/v7x); f32 denominator.
        e = jnp.exp((scores - smax).astype(cdt))
        denom = jnp.sum(e.astype(f32), axis=-1, keepdims=True)
        if approx_recip:
            inv = pl.reciprocal(denom, approx=True)          # EUP, not VPU div
        else:
            inv = 1.0 / denom
        attn = e * inv.astype(cdt)
        attn = jnp.where(bad, 0.0, attn)
        lo, hi = h * dk, (h + 1) * dk
        xo_ref[:, lo:hi] = jnp.dot(attn, v[:, lo:hi],
                                   preferred_element_type=f32).astype(cdt)

    # Fused output projection for this head group (reduction over grid axis g).
    acc_ref[...] += jnp.dot(xo_ref[...], wout_ref[...],
                            preferred_element_type=f32)

    @pl.when(g == pl.num_programs(2) - 1)
    def _finalize():
        o_ref[0] = (acc_ref[...] + bout_ref[...]).astype(o_ref.dtype)


def pallas_rel_attention(q, k, v, p, bu2, bv2, mask_i8, w_out, b_out, *,
                         n_head, d_k, scale, out_dtype, approx_recip=True,
                         tq_max=256, vmem_budget=24 << 20):
    """q/k/v: (B,T,H*dk) bf16; p: (P,T2,H*dk); bu2/bv2: (1,H*dk) f32;
    mask_i8: (B,Tm,T2) int8; w_out: (H*dk, F) bf16; b_out: (F,) f32.
    Returns (B, T1, F) in out_dtype with the output projection fused in."""
    B, T1, HD = q.shape
    T2 = k.shape[1]
    F = w_out.shape[1]
    Tm = mask_i8.shape[1]
    assert Tm in (1, T1), "mask must be (B,1,T2) or (B,T1,T2)"
    TQ = T1 if T1 <= tq_max else tq_max
    QG = pl.cdiv(T1, TQ)
    Tm_blk = 1 if Tm == 1 else TQ
    cb = q.dtype.itemsize
    ob = jnp.dtype(out_dtype).itemsize

    def est_fn(hb):
        hbd = hb * d_k
        sz = 2 * TQ * hbd * cb                    # q (double buffered)
        sz += 3 * 2 * T2 * hbd * cb               # k, v, p
        sz += 2 * Tm_blk * T2 * 1                 # int8 mask
        sz += 2 * hbd * F * cb + 2 * F * 4        # w_out, b_out
        sz += 2 * TQ * F * ob                     # out block
        sz += TQ * F * 4 + TQ * hbd * cb          # acc + xo scratch
        sz += 2 * (TQ + T2) * 2 * hbd * cb        # q_cat/kp_cat + qu/qv temps
        sz += 4 * TQ * T2 * 4                     # scores/e/attn temporaries
        return sz

    # Largest 128-lane-aligned head group that fits the VMEM budget.
    divs = [d for d in range(n_head, 0, -1) if n_head % d == 0]
    aligned = [d for d in divs if (d * d_k) % 128 == 0]
    if not aligned:
        hb = n_head                    # hbd == HD: full-dim blocks (layout-exempt)
    else:
        hb = aligned[-1]
        for cand in aligned:           # largest first
            if est_fn(cand) <= vmem_budget:
                hb = cand
                break
    G = n_head // hb
    hbd = hb * d_k

    p_batched = p.shape[0] != 1
    p_map = (lambda b, qi, g: (b, 0, g)) if p_batched else (lambda b, qi, g: (0, 0, g))
    if Tm == 1:
        mask_spec = pl.BlockSpec((1, 1, T2), lambda b, qi, g: (b, 0, 0))
    else:
        mask_spec = pl.BlockSpec((1, TQ, T2), lambda b, qi, g: (b, qi, 0))

    kernel = functools.partial(_rel_attn_kernel, scale=scale, hb=hb, dk=d_k,
                               approx_recip=approx_recip)
    # Grid (B, QG, G): head-group axis innermost (reduction for the fused out
    # projection).  For the common G == 1 case k/v/p/w_out keep the same block
    # index across query tiles and are not re-DMA'd; the mask block index is
    # constant across g in all cases.
    return pl.pallas_call(
        kernel,
        out_shape=jax.ShapeDtypeStruct((B, T1, F), out_dtype),
        grid=(B, QG, G),
        in_specs=[
            pl.BlockSpec((1, TQ, hbd), lambda b, qi, g: (b, qi, g)),   # q
            pl.BlockSpec((1, T2, hbd), lambda b, qi, g: (b, 0, g)),    # k
            pl.BlockSpec((1, T2, hbd), lambda b, qi, g: (b, 0, g)),    # v
            pl.BlockSpec((1, T2, hbd), p_map),                         # p
            pl.BlockSpec((1, hbd), lambda b, qi, g: (0, g)),           # pos_bias_u
            pl.BlockSpec((1, hbd), lambda b, qi, g: (0, g)),           # pos_bias_v
            mask_spec,                                                 # mask (int8)
            pl.BlockSpec((hbd, F), lambda b, qi, g: (g, 0)),           # w_out slice
            pl.BlockSpec((1, F), lambda b, qi, g: (0, 0)),             # b_out
        ],
        out_specs=pl.BlockSpec((1, TQ, F), lambda b, qi, g: (b, qi, 0)),
        scratch_shapes=[
            pltpu.VMEM((TQ, F), jnp.float32),      # out-projection accumulator
            pltpu.VMEM((TQ, hbd), q.dtype),        # per-head context buffer
        ],
        compiler_params=pltpu.CompilerParams(
            dimension_semantics=("parallel", "parallel", "arbitrary"),
            vmem_limit_bytes=_vmem_limit(est_fn(hb))),
    )(q, k, v, p, bu2, bv2, mask_i8, w_out, b_out.reshape(1, F))


# ------------------------------ module wrapper ------------------------------ #
class RelPositionMultiHeadedAttentionPallas:
    """wenet RelPositionMultiHeadedAttention, dropout_rate=0, empty cache.

    Matmul weights stored pre-transposed (din, dout) in bf16 for the MXU;
    biases and pos biases kept in f32 (applied on the f32 accumulator).
    """

    def __init__(self, n_head, n_feat, key, compute_dtype=jnp.bfloat16,
                 approx_recip=True):
        self.h = n_head
        self.d_k = n_feat // n_head
        self.n_feat = n_feat
        self.compute_dtype = compute_dtype
        self.approx_recip = approx_recip
        ks = jax.random.split(key, 10)
        s = 1.0 / math.sqrt(n_feat)
        f32 = jnp.float32
        cdt = compute_dtype

        def u(k_, shape, bound):
            return jax.random.uniform(k_, shape, f32, -bound, bound)

        self.w_q = u(ks[0], (n_feat, n_feat), s).astype(cdt)
        self.b_q = u(ks[1], (n_feat,), s)
        self.w_k = u(ks[2], (n_feat, n_feat), s).astype(cdt)
        self.b_k = u(ks[3], (n_feat,), s)
        self.w_v = u(ks[4], (n_feat, n_feat), s).astype(cdt)
        self.b_v = u(ks[5], (n_feat,), s)
        self.w_out = u(ks[6], (n_feat, n_feat), s).astype(cdt)
        self.b_out = u(ks[7], (n_feat,), s)
        self.w_pos = u(ks[8], (n_feat, n_feat), s).astype(cdt)   # no bias
        bound = math.sqrt(6.0 / (self.h + self.d_k))             # xavier_uniform
        ku, kv = jax.random.split(ks[9])
        self.pos_bias_u = u(ku, (self.h, self.d_k), bound)
        self.pos_bias_v = u(kv, (self.h, self.d_k), bound)
        # Fused QKV weight (built once) and flattened pos biases.
        self.w_qkv = jnp.concatenate([self.w_q, self.w_k, self.w_v], axis=1)  # (F,3F) bf16
        self.b_qkv = jnp.concatenate([self.b_q, self.b_k, self.b_v])          # (3F,) f32
        self._bu2 = self.pos_bias_u.reshape(1, self.h * self.d_k)
        self._bv2 = self.pos_bias_v.reshape(1, self.h * self.d_k)

    def __call__(self, query, key, value, mask, pos_emb):
        B, T1, F = query.shape
        T2 = key.shape[1]
        H, dk = self.h, self.d_k
        HD = H * dk
        cdt = self.compute_dtype

        q_in = query.astype(cdt).reshape(-1, F)
        if (query is key) and (key is value):
            # Self-attention: one pass over the activation for q/k/v.
            # (Object-identity check: equal-but-distinct arrays fall back to
            #  the separate-projection path — a perf fallback, not an error.)
            q2, k2, v2 = pallas_qkv_fused(q_in, self.w_qkv, self.b_qkv, HD)
        else:
            q2 = pallas_linear(q_in, self.w_q, self.b_q)
            q2, k2, v2 = (q2,
                          pallas_linear(key.astype(cdt).reshape(-1, F), self.w_k, self.b_k),
                          pallas_linear(value.astype(cdt).reshape(-1, F), self.w_v, self.b_v))
        q = q2.reshape(B, T1, HD)
        k = k2.reshape(B, T2, HD)
        v = v2.reshape(B, T2, HD)

        p = pallas_linear(pos_emb.astype(cdt).reshape(-1, F), self.w_pos, None)
        p = p.reshape(pos_emb.shape[0], T2, HD)

        mask_i8 = (mask != 0).astype(jnp.int8)
        scale = 1.0 / math.sqrt(dk)
        out = pallas_rel_attention(
            q, k, v, p, self._bu2, self._bv2, mask_i8, self.w_out, self.b_out,
            n_head=H, d_k=dk, scale=scale, out_dtype=query.dtype,
            approx_recip=self.approx_recip)                       # (B, T1, F)

        # Cache in the module's head-first layout (outside the hot path).
        new_cache = (k.reshape(B, T2, H, dk).transpose(0, 2, 1, 3).astype(query.dtype),
                     v.reshape(B, T2, H, dk).transpose(0, 2, 1, 3).astype(query.dtype))
        return out, new_cache


# ------------------------------ pure-JAX reference -------------------------- #
def reference_forward(mod, query, key, value, mask, pos_emb):
    f32 = jnp.float32
    w_q, w_k, w_v = mod.w_q.astype(f32), mod.w_k.astype(f32), mod.w_v.astype(f32)
    w_pos, w_out = mod.w_pos.astype(f32), mod.w_out.astype(f32)
    B, T1, F = query.shape
    T2 = key.shape[1]
    H, dk = mod.h, mod.d_k
    q = (query @ w_q + mod.b_q).reshape(B, T1, H, dk)
    k = (key @ w_k + mod.b_k).reshape(B, T2, H, dk).transpose(0, 2, 1, 3)
    v = (value @ w_v + mod.b_v).reshape(B, T2, H, dk).transpose(0, 2, 1, 3)
    p = (pos_emb @ w_pos).reshape(pos_emb.shape[0], T2, H, dk).transpose(0, 2, 1, 3)
    p = jnp.broadcast_to(p, (B,) + p.shape[1:])

    q_u = (q + mod.pos_bias_u).transpose(0, 2, 1, 3)   # (B,H,T1,dk)
    q_v = (q + mod.pos_bias_v).transpose(0, 2, 1, 3)
    matrix_ac = jnp.einsum("bhqd,bhkd->bhqk", q_u, k)
    matrix_bd = jnp.einsum("bhqd,bhkd->bhqk", q_v, p)
    scores = (matrix_ac + matrix_bd) / math.sqrt(dk)

    m = (mask[:, None, :, :] == 0)                     # (B,1,Tm,T2)
    scores = jnp.where(m, -jnp.inf, scores)
    attn = jax.nn.softmax(scores, axis=-1)
    attn = jnp.where(m, 0.0, attn)
    x = jnp.einsum("bhqk,bhkd->bhqd", attn, v)
    x = x.transpose(0, 2, 1, 3).reshape(B, T1, H * dk)
    return x @ w_out + mod.b_out


# ----------------------------------- main ----------------------------------- #
if __name__ == "__main__":
    B, T, n_feat, n_head = 2, 8, 32, 4
    root = jax.random.PRNGKey(0)
    k_param, k_x, k_k, k_v, k_p = jax.random.split(root, 5)

    mod = RelPositionMultiHeadedAttentionPallas(n_head, n_feat, k_param)

    x = jax.random.normal(k_x, (B, T, n_feat), jnp.float32)
    pos_emb = jax.random.normal(k_p, (1, T, n_feat), jnp.float32)

    # Case A: encoder self-attention (fused QKV path), (B, 1, T) padding mask.
    mask_a = jnp.ones((B, 1, T), jnp.int32).at[1, 0, T - 2:].set(0)
    out_a, cache_a = mod(x, x, x, mask_a, pos_emb)
    out_a = jax.block_until_ready(out_a)
    ref_a = reference_forward(mod, x, x, x, mask_a, pos_emb)
    assert out_a.shape == (B, T, n_feat)
    err_a = float(jnp.max(jnp.abs(out_a - ref_a)))
    assert jnp.allclose(out_a, ref_a, rtol=5e-2, atol=5e-2), \
        f"self-attn max abs diff {err_a}"

    # Case B: distinct q/k/v (separate projection path), (B, T, T) causal mask.
    key_t = jax.random.normal(k_k, (B, T, n_feat), jnp.float32)
    val_t = jax.random.normal(k_v, (B, T, n_feat), jnp.float32)
    mask_b = jnp.broadcast_to(jnp.tril(jnp.ones((T, T), jnp.int32))[None], (B, T, T))
    out_b, cache_b = mod(x, key_t, val_t, mask_b, pos_emb)
    out_b = jax.block_until_ready(out_b)
    ref_b = reference_forward(mod, x, key_t, val_t, mask_b, pos_emb)
    err_b = float(jnp.max(jnp.abs(out_b - ref_b)))
    assert jnp.allclose(out_b, ref_b, rtol=5e-2, atol=5e-2), \
        f"cross-attn max abs diff {err_b}"

    print("KERNEL_OK")
</pallas_src>

<mosaic_0001>
module attributes {stable_mosaic.version = 11 : i64} {
  func.func @_qkv_kernel(%arg0: i32, %arg1: memref<16x32xbf16, #tpu.memory_space<vmem>>, %arg2: memref<32x96xbf16, #tpu.memory_space<vmem>>, %arg3: memref<1x96xf32, #tpu.memory_space<vmem>>, %arg4: memref<16x32xbf16, #tpu.memory_space<vmem>>, %arg5: memref<16x32xbf16, #tpu.memory_space<vmem>>, %arg6: memref<16x32xbf16, #tpu.memory_space<vmem>>) attributes {dimension_semantics = [#tpu.dimension_semantics<parallel>], iteration_bounds = array<i64: 1>, scalar_prefetch = 0 : i64, scratch_operands = 0 : i64, tpu.core_type = #tpu.core_type<tc>, window_params = [{transform_indices = @transform_0, window_bounds = array<i64: 16, 32>}, {pipeline_mode = #tpu.pipeline_mode<synchronous>, transform_indices = @transform_1, window_bounds = array<i64: 32, 96>}, {pipeline_mode = #tpu.pipeline_mode<synchronous>, transform_indices = @transform_2, window_bounds = array<i64: 1, 96>}, {transform_indices = @transform_3, window_bounds = array<i64: 16, 32>}, {transform_indices = @transform_4, window_bounds = array<i64: 16, 32>}, {transform_indices = @transform_5, window_bounds = array<i64: 16, 32>}]} {
    %c0 = arith.constant 0 : index
    %c0_0 = arith.constant 0 : index
    %0 = vector.load %arg1[%c0, %c0_0] : memref<16x32xbf16, #tpu.memory_space<vmem>>, vector<16x32xbf16>
    %c0_1 = arith.constant 0 : index
    %c0_2 = arith.constant 0 : index
    %1 = vector.load %arg2[%c0_1, %c0_2] : memref<32x96xbf16, #tpu.memory_space<vmem>>, vector<32x96xbf16>
    %cst = arith.constant dense<0.000000e+00> : vector<16x96xf32>
    %2 = tpu.matmul %0, %1, %cst {dimension_numbers = #tpu.dot_dimension_numbers<[1], [0], [0], [1], [0, 0, 1, 1], [], []>} : vector<16x32xbf16>, vector<32x96xbf16>, vector<16x96xf32> -> vector<16x96xf32>
    %c0_3 = arith.constant 0 : index
    %c0_4 = arith.constant 0 : index
    %3 = vector.load %arg3[%c0_3, %c0_4] : memref<1x96xf32, #tpu.memory_space<vmem>>, vector<1x96xf32>
    %4 = vector.broadcast %3 : vector<1x96xf32> to vector<16x96xf32>
    %5 = arith.addf %2, %4 : vector<16x96xf32>
    %6 = vector.extract_strided_slice %5 {offsets = [0, 0], sizes = [16, 32], strides = [1, 1]} : vector<16x96xf32> to vector<16x32xf32>
    %7 = arith.truncf %6 : vector<16x32xf32> to vector<16x32xbf16>
    %c0_5 = arith.constant 0 : index
    %c0_6 = arith.constant 0 : index
    %8 = vector.load %arg4[%c0_5, %c0_6] : memref<16x32xbf16, #tpu.memory_space<vmem>>, vector<16x32xbf16>
    tpu.vector_store %arg4[%c0_5, %c0_6], %7 {strides = array<i32>} : memref<16x32xbf16, #tpu.memory_space<vmem>>, vector<16x32xbf16>,
    %9 = vector.extract_strided_slice %5 {offsets = [0, 32], sizes = [16, 32], strides = [1, 1]} : vector<16x96xf32> to vector<16x32xf32>
    %10 = arith.truncf %9 : vector<16x32xf32> to vector<16x32xbf16>
    %c0_7 = arith.constant 0 : index
    %c0_8 = arith.constant 0 : index
    %11 = vector.load %arg5[%c0_7, %c0_8] : memref<16x32xbf16, #tpu.memory_space<vmem>>, vector<16x32xbf16>
    tpu.vector_store %arg5[%c0_7, %c0_8], %10 {strides = array<i32>} : memref<16x32xbf16, #tpu.memory_space<vmem>>, vector<16x32xbf16>,
    %12 = vector.extract_strided_slice %5 {offsets = [0, 64], sizes = [16, 32], strides = [1, 1]} : vector<16x96xf32> to vector<16x32xf32>
    %13 = arith.truncf %12 : vector<16x32xf32> to vector<16x32xbf16>
    %c0_9 = arith.constant 0 : index
    %c0_10 = arith.constant 0 : index
    %14 = vector.load %arg6[%c0_9, %c0_10] : memref<16x32xbf16, #tpu.memory_space<vmem>>, vector<16x32xbf16>
    tpu.vector_store %arg6[%c0_9, %c0_10], %13 {strides = array<i32>} : memref<16x32xbf16, #tpu.memory_space<vmem>>, vector<16x32xbf16>,
    return
  }
  func.func @transform_0(%arg0: i32) -> (i32, i32) {
    %c0_i32 = arith.constant 0 : i32
    %c0_i32_0 = arith.constant 0 : i32
    return %arg0, %c0_i32 : i32, i32
  }
  func.func @transform_1(%arg0: i32) -> (i32, i32) {
    %c0_i32 = arith.constant 0 : i32
    %c0_i32_0 = arith.constant 0 : i32
    %c0_i32_1 = arith.constant 0 : i32
    return %c0_i32, %c0_i32_0 : i32, i32
  }
  func.func @transform_2(%arg0: i32) -> (i32, i32) {
    %c0_i32 = arith.constant 0 : i32
    %c0_i32_0 = arith.constant 0 : i32
    %c0_i32_1 = arith.constant 0 : i32
    return %c0_i32, %c0_i32_0 : i32, i32
  }
  func.func @transform_3(%arg0: i32) -> (i32, i32) {
    %c0_i32 = arith.constant 0 : i32
    %c0_i32_0 = arith.constant 0 : i32
    return %arg0, %c0_i32 : i32, i32
  }
  func.func @transform_4(%arg0: i32) -> (i32, i32) {
    %c0_i32 = arith.constant 0 : i32
    %c0_i32_0 = arith.constant 0 : i32
    return %arg0, %c0_i32 : i32, i32
  }
  func.func @transform_5(%arg0: i32) -> (i32, i32) {
    %c0_i32 = arith.constant 0 : i32
    %c0_i32_0 = arith.constant 0 : i32
    return %arg0, %c0_i32 : i32, i32
  }
}

</mosaic_0001>

<bundles_post_ra>
// kernel: tpu_custom_call.1
= control target key start
LH: loop header
LB: loop body
LE: loop exit
PB: predicated region body
PF: predicated region fallthrough
CT: control target
= control target key end

     0   :  { %11 = vsyncpa [#allocation3], 0  ;;  %s483_s0 = inlined_call_operand.hbm [shape: bf16[16,32], index: 0, kind: input, shape index: {}]   ;;  %s484_s1 = inlined_call_operand.hbm [shape: bf16[32,96], index: 1, kind: input, shape index: {}]   ;;  %s485_s2 = inlined_call_operand.vmem [shape: f32[1,96], index: 2, kind: input, shape index: {}]   ;;  %s486_s3 = inlined_call_operand.hbm [shape: bf16[16,32], index: 3, kind: output, shape index: {0}]   ;;  %s487_s4 = inlined_call_operand.hbm [shape: bf16[16,32], index: 4, kind: output, shape index: {1}]   ;;  %s488_s5 = inlined_call_operand.hbm [shape: bf16[16,32], index: 5, kind: output, shape index: {2}]  }
   0x1   :  { %12 = vsyncpa [#allocation6], 0 }
   0x2   :  { %13 = vsyncpa [#allocation4], 0 }
   0x3   :  { %14 = vsyncpa [#allocation9], 0  ;;  %s350_s18 = smov [#allocation2]   ;;  %s232_s22 = scalar_lea.hbm %s483_s0, 128 }
   0x4   :  { %s20_s19 = sshll.u32 %s350_s18, 4  ;;  %p233_p0 = scmp.ne.s32.totalorder %s483_s0, %s232_s22  ;;  %s21_s19 = int_to_ptr.vmem [resolvable:$true] %s20_s19 }
   0x5   :  { %p236_p1 = scmp.lt.u32.totalorder %s232_s22, %s483_s0 }
   0x7   :  { %p238_p2 = pnand %p236_p1, %p233_p0 }
   0x9   :  { %241 = shalt.err (!%p238_p2)
}
   0xa   :  { %s242_s27 = scalar_lea.vmem %s21_s19, 128  ;;  %p247_p4 = scmp.lt.s32.totalorder %s21_s19, %s21_s19 }
   0xb   :  { %p243_p3 = scmp.ne.s32.totalorder %s21_s19, %s242_s27  ;;  %p248_p5 = scmp.lt.s32.totalorder %s242_s27, %s242_s27 }
   0xd   :  { %p249_p6 = por %p248_p5, %p247_p4 }
   0xf   :  { %p250_p7 = pnand %p249_p6, %p243_p3 }
  0x11   :  { %253 = shalt.err (!%p250_p7)
}
  0x12   :  { %s351_s28 = smov 64   ;;  %s352_s29 = smov 4  }
  0x13   :  { %26 = dma.hbm_to_vmem [thread:$0]  %s483_s0, 128, %s21_s19, [#allocation3], %s351_s28, %s351_s28, %s352_s29  }
  0x14   :  { %s353_s7 = smov [#allocation5]   ;;  %s254_s11 = scalar_lea.hbm %s484_s1, 256 }
  0x15   :  { %s32_s8 = sshll.u32 %s353_s7, 4  ;;  %p255_p8 = scmp.ne.s32.totalorder %s484_s1, %s254_s11  ;;  %s33_s8 = int_to_ptr.vmem [resolvable:$true] %s32_s8 }
  0x16   :  { %p258_p9 = scmp.lt.u32.totalorder %s254_s11, %s484_s1 }
  0x18   :  { %p260_p10 = pnand %p258_p9, %p255_p8 }
  0x1a   :  { %263 = shalt.err (!%p260_p10)
}
  0x1b   :  { %s264_s16 = scalar_lea.vmem %s33_s8, 256  ;;  %p269_p12 = scmp.lt.s32.totalorder %s33_s8, %s33_s8 }
  0x1c   :  { %p265_p11 = scmp.ne.s32.totalorder %s33_s8, %s264_s16  ;;  %p270_p13 = scmp.lt.s32.totalorder %s264_s16, %s264_s16 }
  0x1e   :  { %p271_p0 = por %p270_p13, %p269_p12 }
  0x20   :  { %p272_p1 = pnand %p271_p0, %p265_p11 }
  0x22   :  { %275 = shalt.err (!%p272_p1)
}
  0x23   :  { %38 = dma.hbm_to_vmem [thread:$0]  %s484_s1, 256, %s33_s8, [#allocation6], %s351_s28, %s351_s28, %s352_s29  }
  0x24   :  { %342 = dma.done.wait [#allocation3], 128  }
  0x25   :  { %343 = vsyncadd [#allocation3], 4294967168 }
  0x26   :  { %344 = dma.done.wait [#allocation6], 256  }
  0x27   :  { %345 = vsyncadd [#allocation6], 4294967040  ;;  %v354_v0 = vmov 0.0   ;;  %vm355_vm0 = vmmov 0   ;;  %v229_v1 = vld [vmem:[#allocation5] sm:$0xff]   ;;  %v230_v2 = vld [vmem:[#allocation5 + $0x8] sm:$0xff]  }
  0x28   :  { %211 = vmatprep.subr.bf16.mxu0 %v354_v0  ;;  %215 = vmatprep.mubr.msk.bf16.mxu0 %vm355_vm0, %v354_v0  ;;  %v231_v3 = vld [vmem:[#allocation2] sm:$0xff]   ;;  %vm78_vm1 = vcmask 261120   ;;  %vm131_vm2 = vcmask 257024   ;;  %s356_s1 = smov [#allocation7]   ;;  %s357_s21 = smov 96  }
  0x29   :  { %212 = vmatpush3.bf16.msra.mxu0 %v229_v1  ;;  %v199_v4 = vld [vmem:[%s485_s2] ss:$0 sm:$0xff]  ;;  %s155_s20 = sshll.u32 %s356_s1, 4  ;;  %s156_s20 = int_to_ptr.vmem [resolvable:$true] %s155_s20 }
  0x2a   :  { %213 = vmatprep.subr.bf16.mxu0 %v354_v0  ;;  %s276_s2 = scalar_lea.vmem %s156_s20, 128  ;;  %p281_p3 = scmp.lt.s32.totalorder %s156_s20, %s156_s20 }
  0x2b   :  { %p277_p2 = scmp.ne.s32.totalorder %s156_s20, %s276_s2  ;;  %p282_p4 = scmp.lt.s32.totalorder %s276_s2, %s276_s2 }
  0x2d   :  { %214 = vmatpush3.bf16.msra.mxu0 %v230_v2  ;;  %p283_p5 = por %p282_p4, %p281_p3 }
  0x2f   :  { %p284_p6 = pnand %p283_p5, %p277_p2 }
  0x30   :  { %216 = vmatmul.mubr.msk.bf16.vlgmr.msra.gmra.mrb[0].mxu0 %vm78_vm1, %v231_v3 }
 0x103   :  { %v116_v5 = vpop.f32.mrb[0].mxu0 }
 0x104   :  { %v117_v6 = vadd.f32 %v199_v4, %v116_v5  ;;  %v217_v7 = vpop.f32.mrb[1].mxu0 }
 0x105   :  { %v119_v8 = vpop.f32.mrb[2].mxu0 }
 0x106   :  { %v206_v9 = vpack.c.bf16 %v117_v6, %v117_v6  ;;  %v120_v10 = vadd.f32 %v199_v4, %v119_v8  ;;  %v218_v11 = vpop.f32.mrb[3].mxu0 }
 0x108   :  { %v207_v12 = vpack.c.bf16 %v120_v10, %v120_v10  ;;  %142 = vrot.lane.b32.xlu1 %v206_v9, %s351_s28  ;;  %134 = vrot.lane.b32.xlu0 %v206_v9, %s357_s21  ;;  %132 = vst.msk [vmem:[#allocation7] sm:$0xf] %vm131_vm2, %v206_v9 }
 0x10a   :  { %133 = vst.msk [vmem:[#allocation7 + $0x4] sm:$0xf] %vm131_vm2, %v207_v12 }
 0x10b   :  { %287 = shalt.err (!%p284_p6)
}
 0x10c   :  { %s288_s24 = scalar_lea.hbm %s486_s3, 128 }
 0x10d   :  { %p289_p7 = scmp.ne.s32.totalorder %s486_s3, %s288_s24  ;;  %p292_p8 = scmp.lt.u32.totalorder %s288_s24, %s486_s3 }
 0x10f   :  { %p294_p9 = pnand %p292_p8, %p289_p7 }
 0x111   :  { %297 = shalt.err (!%p294_p9)
}
 0x112   :  { %161 = dma.vmem_to_hbm [thread:$0]  %s156_s20, 128, %s486_s3, [#allocation4], %s351_s28, %s351_s28, %s352_s29  }
 0x113   :  { %144 = vrot.lane.b32.xlu1 %v207_v12, %s351_s28  ;;  %136 = vrot.lane.b32.xlu0 %v207_v12, %s357_s21  ;;  %s358_s8 = smov [#allocation8]   ;;  %s359_s10 = smov [#allocation10]  }
 0x114   :  { %s167_s9 = sshll.u32 %s358_s8, 4  ;;  %s179_s11 = sshll.u32 %s359_s10, 4  ;;  %s168_s9 = int_to_ptr.vmem [resolvable:$true] %s167_s9  ;;  %s444_s11 = int_to_ptr.vmem [resolvable:$true] %s179_s11 }
 0x115   :  { %s298_s3 = scalar_lea.vmem %s168_s9, 128  ;;  %p303_p11 = scmp.lt.s32.totalorder %s168_s9, %s168_s9 }
 0x116   :  { %p299_p10 = scmp.ne.s32.totalorder %s168_s9, %s298_s3  ;;  %p304_p12 = scmp.lt.s32.totalorder %s298_s3, %s298_s3 }
 0x118   :  { %p305_p13 = por %p304_p12, %p303_p11 }
 0x11a   :  { %p306_p0 = pnand %p305_p13, %p299_p10 }
 0x17a   :  { %v143_v13 = vpop.permute.xlu1 %142  ;;  %v135_v14 = vpop.permute.xlu0 %134 }
 0x17b   :  { %148 = vst.msk [vmem:[#allocation10] sm:$0xf] %vm131_vm2, %v143_v13  ;;  %140 = vst.msk [vmem:[#allocation8] sm:$0xf] %vm131_vm2, %v135_v14 }
 0x185   :  { %v145_v15 = vpop.permute.xlu1 %144  ;;  %v137_v16 = vpop.permute.xlu0 %136 }
 0x186   :  { %149 = vst.msk [vmem:[#allocation10 + $0x4] sm:$0xf] %vm131_vm2, %v145_v15  ;;  %141 = vst.msk [vmem:[#allocation8 + $0x4] sm:$0xf] %vm131_vm2, %v137_v16 }
 0x187   :  { %309 = shalt.err (!%p306_p0)
}
 0x188   :  { %s310_s14 = scalar_lea.hbm %s487_s4, 128 }
 0x189   :  { %p311_p1 = scmp.ne.s32.totalorder %s487_s4, %s310_s14  ;;  %p314_p2 = scmp.lt.u32.totalorder %s310_s14, %s487_s4 }
 0x18b   :  { %p316_p3 = pnand %p314_p2, %p311_p1 }
 0x18d   :  { %319 = shalt.err (!%p316_p3)
}
 0x18e   :  { %173 = dma.vmem_to_hbm [thread:$0]  %s168_s9, 128, %s487_s4, [#allocation9], %s351_s28, %s351_s28, %s352_s29  }
 0x18f   :  { %s320_s1 = scalar_lea.vmem %s444_s11, 128  ;;  %p325_p5 = scmp.lt.s32.totalorder %s444_s11, %s444_s11 }
 0x190   :  { %p321_p4 = scmp.ne.s32.totalorder %s444_s11, %s320_s1  ;;  %p326_p6 = scmp.lt.s32.totalorder %s320_s1, %s320_s1 }
 0x192   :  { %p327_p7 = por %p326_p6, %p325_p5 }
 0x194   :  { %p328_p8 = pnand %p327_p7, %p321_p4 }
 0x196   :  { %331 = shalt.err (!%p328_p8)
}
 0x197   :  { %s332_s2 = scalar_lea.hbm %s488_s5, 128 }
 0x198   :  { %p333_p9 = scmp.ne.s32.totalorder %s488_s5, %s332_s2  ;;  %p336_p10 = scmp.lt.u32.totalorder %s332_s2, %s488_s5 }
 0x19a   :  { %p338_p11 = pnand %p336_p10, %p333_p9 }
 0x19c   :  { %341 = shalt.err (!%p338_p11)
}
 0x19d   :  { %185 = dma.vmem_to_hbm [thread:$0]  %s444_s11, 128, %s488_s5, [#allocation9], %s351_s28, %s351_s28, %s352_s29  }
 0x19e   :  { %346 = dma.done.wait [#allocation4], 128  }
 0x19f   :  { %347 = vsyncadd [#allocation4], 4294967168 }
 0x1a0   :  { %348 = dma.done.wait [#allocation9], 256  }
 0x1a1   :  { %349 = vsyncadd [#allocation9], 4294967040 }
 0x1a2   :  { %195 = vsyncpa [#allocation3], 1 }
 0x1a3   :  { %196 = vsyncpa [#allocation6], 1 }
 0x1a4   :  { %197 = vsyncpa [#allocation4], 1 }
 0x1a5   :  { %198 = vsyncpa [#allocation9], 1 }

</bundles_post_ra>
